<compile_context>
chip_gen: v6e
topology: v6e:2x2x1
jax: 0.10.0
libtpu: 0.0.40
codegen_flags: <defaults>
</compile_context>

<pallas_src>
import math

import jax
import jax.numpy as jnp
from jax.experimental import pallas as pl
from jax.experimental.pallas import tpu as pltpu

_SUBLANE = 8  # f32 second-to-last-dim tiling unit


def _round_up(x, m):
    return ((x + m - 1) // m) * m


def sample_mlp_kernel(emb_ref, w1_ref, b1_ref, w2_ref, b2_ref, out_ref):
    # Fused Linear -> ReLU -> Linear on one batch tile, all VMEM resident.
    emb = emb_ref[...]                                    # [tb, D_in]
    h1 = jnp.dot(emb, w1_ref[...],
                 preferred_element_type=jnp.float32)      # [tb, H]     (MXU)
    h1 = h1 + b1_ref[...]                                 # + [1, H]    (VPU)
    h2 = jnp.maximum(h1, 0.0)                             # ReLU        (VPU)
    out = jnp.dot(h2, w2_ref[...],
                  preferred_element_type=jnp.float32)     # [tb, D_out] (MXU)
    out = out + b2_ref[...]                               # + [1, D_out]
    out_ref[...] = out.astype(out_ref.dtype)


def sample_forward_pallas(emb, w1, b1, w2, b2, *, block_b=2048):
    """out = relu(emb @ w1 + b1) @ w2 + b2, batch-tiled Pallas kernel."""
    B, d_in = emb.shape
    H = w1.shape[1]
    d_out = w2.shape[1]

    # Batch tile: sublane-aligned, capped at block_b.  No explicit padding of
    # emb / out: the cdiv grid lets Pallas handle the partial last block.
    tb = min(block_b, _round_up(B, _SUBLANE))
    # v7x has two TensorCores: for non-tiny batches keep >=2 grid steps so the
    # "parallel" batch axis actually shards across both cores (no-op on
    # single-TC v5e/v6e).
    if B >= 256 and pl.cdiv(B, tb) < 2:
        tb = max(_SUBLANE, _round_up(pl.cdiv(B, 2), _SUBLANE))

    grid = (pl.cdiv(B, tb),)

    return pl.pallas_call(
        sample_mlp_kernel,
        out_shape=jax.ShapeDtypeStruct((B, d_out), emb.dtype),
        grid_spec=pltpu.PrefetchScalarGridSpec(
            num_scalar_prefetch=0,
            grid=grid,
            in_specs=[
                # emb tile marches down the batch; weights/biases keep block
                # index (0, 0) every step -> resident in VMEM, no re-DMA.
                pl.BlockSpec((tb, d_in), lambda i: (i, 0)),
                pl.BlockSpec((d_in, H), lambda i: (0, 0)),
                pl.BlockSpec((1, H), lambda i: (0, 0)),
                pl.BlockSpec((H, d_out), lambda i: (0, 0)),
                pl.BlockSpec((1, d_out), lambda i: (0, 0)),
            ],
            out_specs=pl.BlockSpec((tb, d_out), lambda i: (i, 0)),
        ),
        compiler_params=pltpu.CompilerParams(
            dimension_semantics=("parallel",),
        ),
    )(emb, w1, b1, w2, b2)


def sample_forward(emb, w1, b1, w2, b2, *, block_b=2048, min_pallas_batch=512):
    """Batch-size-gated forward: plain XLA at tiny B, Pallas kernel at large B."""
    if emb.shape[0] < min_pallas_batch:
        # 1-2 small XLA fusions; beats pallas_call overhead at these shapes.
        return jnp.maximum(emb @ w1 + b1, 0.0) @ w2 + b2
    return sample_forward_pallas(emb, w1, b1, w2, b2, block_b=block_b)


def init_params(key, hid_pos, hid_threat, hid_sam, out_size):
    """Deterministic init mimicking PyTorch nn.Linear defaults (U(+/- 1/sqrt(fan_in)))."""
    d_in = hid_pos + hid_threat
    k1, k2, k3, k4 = jax.random.split(key, 4)
    bound1 = 1.0 / math.sqrt(d_in)
    bound2 = 1.0 / math.sqrt(hid_sam)
    w1 = jax.random.uniform(k1, (d_in, hid_sam), jnp.float32, -bound1, bound1)
    b1 = jax.random.uniform(k2, (1, hid_sam), jnp.float32, -bound1, bound1)
    w2 = jax.random.uniform(k3, (hid_sam, out_size), jnp.float32, -bound2, bound2)
    b2 = jax.random.uniform(k4, (1, out_size), jnp.float32, -bound2, bound2)
    return w1, b1, w2, b2


if __name__ == "__main__":
    # Shapes consistent with the module: emb feature dim = hidSizeforPosition +
    # hidSizeforThreat.
    hidSizeforPosition = 16
    hidSizeforThreat = 16
    hidSizeforSam = 64
    outputSize = 8
    batch = 8

    key = jax.random.PRNGKey(0)
    k_emb, k_par = jax.random.split(key)
    emb = jax.random.normal(
        k_emb, (batch, hidSizeforPosition + hidSizeforThreat), jnp.float32)
    w1, b1, w2, b2 = init_params(
        k_par, hidSizeforPosition, hidSizeforThreat, hidSizeforSam, outputSize)

    # Exercise the Pallas kernel directly at the module's native tiny shape.
    out = sample_forward_pallas(emb, w1, b1, w2, b2)
    jax.block_until_ready(out)

    ref = jnp.maximum(emb @ w1 + b1, 0.0) @ w2 + b2
    assert out.shape == (batch, outputSize)
    assert jnp.allclose(out, ref, atol=1e-5, rtol=1e-5)

    # Gated wrapper (XLA path) must agree too.
    out_gated = sample_forward(emb, w1, b1, w2, b2)
    jax.block_until_ready(out_gated)
    assert jnp.allclose(out_gated, ref, atol=1e-5, rtol=1e-5)

    # Exercise the batch-tiled / partial-last-block path (B not a multiple of
    # the tile, forces >=2 grid steps).
    mid_B = 300
    emb_mid = jax.random.normal(
        jax.random.PRNGKey(1), (mid_B, hidSizeforPosition + hidSizeforThreat),
        jnp.float32)
    out_mid = sample_forward_pallas(emb_mid, w1, b1, w2, b2)
    jax.block_until_ready(out_mid)
    ref_mid = jnp.maximum(emb_mid @ w1 + b1, 0.0) @ w2 + b2
    assert out_mid.shape == (mid_B, outputSize)
    assert jnp.allclose(out_mid, ref_mid, atol=1e-4, rtol=1e-5)

    # Large-batch regime: multiple 2048-row tiles with a partial trailing tile.
    big_B = 2600
    emb_big = jax.random.normal(
        jax.random.PRNGKey(2), (big_B, hidSizeforPosition + hidSizeforThreat),
        jnp.float32)
    out_big = sample_forward(emb_big, w1, b1, w2, b2)   # takes the Pallas path
    jax.block_until_ready(out_big)
    ref_big = jnp.maximum(emb_big @ w1 + b1, 0.0) @ w2 + b2
    assert out_big.shape == (big_B, outputSize)
    assert jnp.allclose(out_big, ref_big, atol=1e-4, rtol=1e-5)

    print("KERNEL_OK")
</pallas_src>

<mosaic_0001>
module attributes {stable_mosaic.version = 11 : i64} {
  func.func @sample_mlp_kernel(%arg0: i32, %arg1: memref<8x32xf32, #tpu.memory_space<vmem>>, %arg2: memref<32x64xf32, #tpu.memory_space<vmem>>, %arg3: memref<1x64xf32, #tpu.memory_space<vmem>>, %arg4: memref<64x8xf32, #tpu.memory_space<vmem>>, %arg5: memref<1x8xf32, #tpu.memory_space<vmem>>, %arg6: memref<8x8xf32, #tpu.memory_space<vmem>>) attributes {dimension_semantics = [#tpu.dimension_semantics<parallel>], iteration_bounds = array<i64: 1>, scalar_prefetch = 0 : i64, scratch_operands = 0 : i64, tpu.core_type = #tpu.core_type<tc>, window_params = [{transform_indices = @transform_0, window_bounds = array<i64: 8, 32>}, {pipeline_mode = #tpu.pipeline_mode<synchronous>, transform_indices = @transform_1, window_bounds = array<i64: 32, 64>}, {pipeline_mode = #tpu.pipeline_mode<synchronous>, transform_indices = @transform_2, window_bounds = array<i64: 1, 64>}, {pipeline_mode = #tpu.pipeline_mode<synchronous>, transform_indices = @transform_3, window_bounds = array<i64: 64, 8>}, {pipeline_mode = #tpu.pipeline_mode<synchronous>, transform_indices = @transform_4, window_bounds = array<i64: 1, 8>}, {transform_indices = @transform_5, window_bounds = array<i64: 8, 8>}]} {
    %c0 = arith.constant 0 : index
    %c0_0 = arith.constant 0 : index
    %0 = vector.load %arg1[%c0, %c0_0] : memref<8x32xf32, #tpu.memory_space<vmem>>, vector<8x32xf32>
    %c0_1 = arith.constant 0 : index
    %c0_2 = arith.constant 0 : index
    %1 = vector.load %arg2[%c0_1, %c0_2] : memref<32x64xf32, #tpu.memory_space<vmem>>, vector<32x64xf32>
    %cst = arith.constant dense<0.000000e+00> : vector<8x64xf32>
    %2 = tpu.matmul %0, %1, %cst {dimension_numbers = #tpu.dot_dimension_numbers<[1], [0], [0], [1], [0, 0, 1, 1], [], []>} : vector<8x32xf32>, vector<32x64xf32>, vector<8x64xf32> -> vector<8x64xf32>
    %c0_3 = arith.constant 0 : index
    %c0_4 = arith.constant 0 : index
    %3 = vector.load %arg3[%c0_3, %c0_4] : memref<1x64xf32, #tpu.memory_space<vmem>>, vector<1x64xf32>
    %4 = vector.broadcast %3 : vector<1x64xf32> to vector<8x64xf32>
    %5 = arith.addf %2, %4 : vector<8x64xf32>
    %cst_5 = arith.constant 0.000000e+00 : f32
    %6 = vector.broadcast %cst_5 : f32 to vector<8x64xf32>
    %7 = arith.maximumf %5, %6 : vector<8x64xf32>
    %c0_6 = arith.constant 0 : index
    %c0_7 = arith.constant 0 : index
    %8 = vector.load %arg4[%c0_6, %c0_7] : memref<64x8xf32, #tpu.memory_space<vmem>>, vector<64x8xf32>
    %cst_8 = arith.constant dense<0.000000e+00> : vector<8x8xf32>
    %9 = tpu.matmul %7, %8, %cst_8 {dimension_numbers = #tpu.dot_dimension_numbers<[1], [0], [0], [1], [0, 0, 1, 1], [], []>} : vector<8x64xf32>, vector<64x8xf32>, vector<8x8xf32> -> vector<8x8xf32>
    %c0_9 = arith.constant 0 : index
    %c0_10 = arith.constant 0 : index
    %10 = vector.load %arg5[%c0_9, %c0_10] : memref<1x8xf32, #tpu.memory_space<vmem>>, vector<1x8xf32>
    %11 = vector.broadcast %10 : vector<1x8xf32> to vector<8x8xf32>
    %12 = arith.addf %9, %11 : vector<8x8xf32>
    %c0_11 = arith.constant 0 : index
    %c0_12 = arith.constant 0 : index
    %13 = vector.load %arg6[%c0_11, %c0_12] : memref<8x8xf32, #tpu.memory_space<vmem>>, vector<8x8xf32>
    tpu.vector_store %arg6[%c0_11, %c0_12], %12 {strides = array<i32>} : memref<8x8xf32, #tpu.memory_space<vmem>>, vector<8x8xf32>,
    return
  }
  func.func @transform_0(%arg0: i32) -> (i32, i32) {
    %c0_i32 = arith.constant 0 : i32
    %c0_i32_0 = arith.constant 0 : i32
    return %arg0, %c0_i32 : i32, i32
  }
  func.func @transform_1(%arg0: i32) -> (i32, i32) {
    %c0_i32 = arith.constant 0 : i32
    %c0_i32_0 = arith.constant 0 : i32
    %c0_i32_1 = arith.constant 0 : i32
    return %c0_i32, %c0_i32_0 : i32, i32
  }
  func.func @transform_2(%arg0: i32) -> (i32, i32) {
    %c0_i32 = arith.constant 0 : i32
    %c0_i32_0 = arith.constant 0 : i32
    %c0_i32_1 = arith.constant 0 : i32
    return %c0_i32, %c0_i32_0 : i32, i32
  }
  func.func @transform_3(%arg0: i32) -> (i32, i32) {
    %c0_i32 = arith.constant 0 : i32
    %c0_i32_0 = arith.constant 0 : i32
    %c0_i32_1 = arith.constant 0 : i32
    return %c0_i32, %c0_i32_0 : i32, i32
  }
  func.func @transform_4(%arg0: i32) -> (i32, i32) {
    %c0_i32 = arith.constant 0 : i32
    %c0_i32_0 = arith.constant 0 : i32
    %c0_i32_1 = arith.constant 0 : i32
    return %c0_i32, %c0_i32_0 : i32, i32
  }
  func.func @transform_5(%arg0: i32) -> (i32, i32) {
    %c0_i32 = arith.constant 0 : i32
    %c0_i32_0 = arith.constant 0 : i32
    return %arg0, %c0_i32 : i32, i32
  }
}

</mosaic_0001>

<bundles_post_ra>
// kernel: tpu_custom_call.1
= control target key start
LH: loop header
LB: loop body
LE: loop exit
PB: predicated region body
PF: predicated region fallthrough
CT: control target
= control target key end

     0   :  { %v286_v1 = vmov 0.0   ;;  %vm287_vm0 = vmmov 0   ;;  %s369_s0 = inlined_call_operand.vmem [shape: f32[8,32], index: 0, kind: input, shape index: {}]   ;;  %s370_s1 = inlined_call_operand.vmem [shape: f32[32,64], index: 1, kind: input, shape index: {}]   ;;  %s371_s2 = inlined_call_operand.vmem [shape: f32[1,64], index: 2, kind: input, shape index: {}]   ;;  %s372_s3 = inlined_call_operand.vmem [shape: f32[64,8], index: 3, kind: input, shape index: {}]   ;;  %s373_s4 = inlined_call_operand.vmem [shape: f32[1,8], index: 4, kind: input, shape index: {}]   ;;  %s374_s5 = inlined_call_operand.hbm [shape: f32[8,8], index: 5, kind: output, shape index: {}]  }
   0x1   :  { %v25_v0 = vld [vmem:[%s370_s1 + $0x18] sm:$0xff]  ;;  %231 = vmatprep.subr.mxu0 %v286_v1  ;;  %v24_v2 = vld [vmem:[%s370_s1 + $0x10] sm:$0xff]  ;;  %239 = vmatprep.mubr.msk.f32.mxu0 %vm287_vm0, %v286_v1  ;;  %v23_v5 = vld [vmem:[%s370_s1 + $0x8] sm:$0xff] }
   0x2   :  { %v115_v3 = vld [vmem:[%s372_s3 + $0x38] sm:$0xff]  ;;  %232 = vmatpush3.msra.mxu0 %v25_v0  ;;  %242 = vmatprep.subr.mxu1 %v286_v1  ;;  %v114_v4 = vld [vmem:[%s372_s3 + $0x30] sm:$0xff] }
   0x3   :  { %233 = vmatprep.subr.mxu0 %v286_v1  ;;  %243 = vmatpush3.msra.mxu1 %v115_v3 }
   0x4   :  { %10 = vsyncpa [#allocation3], 0  ;;  %234 = vmatpush3.msra.mxu0 %v24_v2  ;;  %244 = vmatprep.subr.mxu1 %v286_v1  ;;  %v113_v6 = vld [vmem:[%s372_s3 + $0x28] sm:$0xff]  ;;  %v22_v7 = vld [vmem:[%s370_s1] sm:$0xff]  ;;  %vm33_vm1 = vcmask 261120   ;;  %vm123_vm2 = vcmask 523264  }
   0x5   :  { %235 = vmatprep.subr.mxu0 %v286_v1  ;;  %245 = vmatpush3.msra.mxu1 %v114_v4  ;;  %v21_v8 = vld [vmem:[%s369_s0] sm:$0xff]  ;;  %v111_v10 = vld [vmem:[%s372_s3 + $0x18] sm:$0xff]  ;;  %v110_v11 = vld [vmem:[%s372_s3 + $0x10] sm:$0xff]  ;;  %s288_s21 = smov [#allocation2]   ;;  %vm197_vm3 = vcmask 64512  }
   0x6   :  { %236 = vmatpush3.msra.mxu0 %v23_v5  ;;  %246 = vmatprep.subr.mxu1 %v286_v1  ;;  %v112_v9 = vld [vmem:[%s372_s3 + $0x20] sm:$0xff]  ;;  %v109_v12 = vld [vmem:[%s372_s3 + $0x8] sm:$0xff]  ;;  %s205_s22 = sshll.u32 %s288_s21, 4  ;;  %s206_s22 = int_to_ptr.vmem [resolvable:$true] %s205_s22 }
   0x7   :  { %237 = vmatprep.subr.mxu0 %v286_v1  ;;  %247 = vmatpush3.msra.mxu1 %v113_v6  ;;  %v108_v13 = vld [vmem:[%s372_s3] sm:$0xff]  ;;  %s264_s3 = scalar_lea.vmem %s206_s22, 128  ;;  %p269_p1 = scmp.lt.s32.totalorder %s206_s22, %s206_s22 }
   0x8   :  { %238 = vmatpush3.msra.mxu0 %v22_v7  ;;  %248 = vmatprep.subr.mxu1 %v286_v1  ;;  %v213_v14 = vld [vmem:[%s371_s2] ss:$0 sm:$0xff]  ;;  %p265_p0 = scmp.ne.s32.totalorder %s206_s22, %s264_s3  ;;  %p270_p2 = scmp.lt.s32.totalorder %s264_s3, %s264_s3 }
   0x9   :  { %240 = vmatmul.mubr.msk.f32.vlgmr.msra.gmra.mxu0 %vm33_vm1, %v21_v8  ;;  %249 = vmatpush3.msra.mxu1 %v112_v9  ;;  %v215_v19 = vld [vmem:[%s373_s4] ss:$0 sm:$0xff] }
   0xa   :  { %250 = vmatprep.subr.mxu1 %v286_v1  ;;  %258 = vmatprep.mubr.msk.f32.mxu1 %vm287_vm0, %v286_v1  ;;  %p271_p3 = por %p270_p2, %p269_p1 }
   0xb   :  { %251 = vmatpush3.msra.mxu1 %v111_v10 }
   0xc   :  { %252 = vmatprep.subr.mxu1 %v286_v1  ;;  %p272_p4 = pnand %p271_p3, %p265_p0 }
   0xd   :  { %253 = vmatpush3.msra.mxu1 %v110_v11 }
   0xe   :  { %254 = vmatprep.subr.mxu1 %v286_v1 }
   0xf   :  { %255 = vmatpush3.msra.mxu1 %v109_v12 }
  0x10   :  { %256 = vmatprep.subr.mxu1 %v286_v1 }
  0x11   :  { %257 = vmatpush3.msra.mxu1 %v108_v13 }
  0xc9   :  { %v103_v15 = vpop.f32.mrf.mxu0 }
  0xca   :  { %v104_v16 = vadd.f32 %v213_v14, %v103_v15 }
  0xcb   :  { %v241_v17 = vpop.f32.mrf.mxu0 }
  0xcc   :  { %v107_v18 = vmax.f32 %v104_v16, 0.0 }
  0xce   :  { %259 = vmatmul.mubr.msk.f32.vlgmr.msra.gmra.mxu1 %vm123_vm2, %v107_v18 }
 0x18e   :  { %v193_v20 = vpop.f32.mrf.mxu1 }
 0x18f   :  { %v194_v21 = vadd.f32 %v215_v19, %v193_v20 }
 0x190   :  { %v260_v22 = vpop.f32.mrf.mxu1 }
 0x191   :  { %198 = vst.msk [vmem:[#allocation2] sm:$0xff] %vm197_vm3, %v194_v21 }
 0x192   :  { %275 = shalt.err (!%p272_p4)
}
 0x193   :  { %208 = dma.vmem_to_hbm [thread:$0]  %s206_s22, 128, %s374_s5, [#allocation3]  }
 0x194   :  { %284 = dma.done.wait [#allocation3], 128  }
 0x195   :  { %285 = vsyncadd [#allocation3], 4294967168 }
 0x196   :  { %212 = vsyncpa [#allocation3], 1 }

</bundles_post_ra>
